<compile_context>
chip_gen: v7x
topology: tpu7x:2x2x1
jax: 0.10.0
libtpu: 0.0.40
codegen_flags: <defaults>
</compile_context>

<pallas_src>
import functools

import jax
import jax.numpy as jnp
from jax.experimental import pallas as pl
from jax.experimental.pallas import tpu as pltpu

LANE = 128


def _round_up(x, m):
    return ((x + m - 1) // m) * m


def dqn_kernel(x_ref,
               w1_ref, b1_ref,
               w2_ref, b2_ref,
               w3_ref, b3_ref,
               w4_ref, b4_ref,
               o_ref):
    """Fused 4-layer MLP: three Linear+ReLU then final Linear.

    x / weights are bf16 (MXU-native); accumulation, bias add and ReLU in f32.
    """
    x = x_ref[...]                                                     # bf16 [bb, Dp]
    h = jnp.dot(x, w1_ref[...], preferred_element_type=jnp.float32) + b1_ref[...]
    h = jnp.maximum(h, 0.0).astype(jnp.bfloat16)
    h = jnp.dot(h, w2_ref[...], preferred_element_type=jnp.float32) + b2_ref[...]
    h = jnp.maximum(h, 0.0).astype(jnp.bfloat16)
    h = jnp.dot(h, w3_ref[...], preferred_element_type=jnp.float32) + b3_ref[...]
    h = jnp.maximum(h, 0.0).astype(jnp.bfloat16)
    out = jnp.dot(h, w4_ref[...], preferred_element_type=jnp.float32) + b4_ref[...]
    o_ref[...] = out.astype(o_ref.dtype)                               # lane-dense f32 store


@functools.partial(jax.jit, static_argnames=("block_b",))
def dqn_forward(x, params, block_b=512):
    """x: [B, input_dims] f32. params: 4 x (W [in,out], b [1,out]) in f32."""
    (w1, b1), (w2, b2), (w3, b3), (w4, b4) = params
    B, d_in = x.shape
    n_actions = w4.shape[1]

    # ---- wrapper-side padding / dtype prep (all cheap, fused by XLA) ----
    d_in_p = _round_up(d_in, LANE)          # lane-dense first matmul contraction
    n_out_p = _round_up(n_actions, LANE)    # lane-dense final matmul + output store
    bb = min(block_b, _round_up(B, 16))     # batch tile (16-aligned for bf16 sublanes)
    B_p = _round_up(B, bb)

    bf16 = jnp.bfloat16
    x_p = jnp.zeros((B_p, d_in_p), bf16).at[:B, :d_in].set(x.astype(bf16))
    w1_p = jnp.zeros((d_in_p, w1.shape[1]), bf16).at[:d_in, :].set(w1.astype(bf16))
    w2_p = w2.astype(bf16)
    w3_p = w3.astype(bf16)
    w4_p = jnp.zeros((w4.shape[0], n_out_p), bf16).at[:, :n_actions].set(w4.astype(bf16))
    b1_p = b1.astype(jnp.float32)
    b2_p = b2.astype(jnp.float32)
    b3_p = b3.astype(jnp.float32)
    b4_p = jnp.zeros((1, n_out_p), jnp.float32).at[:, :n_actions].set(b4.astype(jnp.float32))

    grid = (B_p // bb,)

    def full_spec(shape):
        # Grid-invariant operand: whole array lives in VMEM every step.
        return pl.BlockSpec(shape, lambda i: (0, 0))

    out_p = pl.pallas_call(
        dqn_kernel,
        out_shape=jax.ShapeDtypeStruct((B_p, n_out_p), jnp.float32),
        grid=grid,
        in_specs=[
            pl.BlockSpec((bb, d_in_p), lambda i: (i, 0)),   # batch-tiled activations
            full_spec(w1_p.shape), full_spec(b1_p.shape),
            full_spec(w2_p.shape), full_spec(b2_p.shape),
            full_spec(w3_p.shape), full_spec(b3_p.shape),
            full_spec(w4_p.shape), full_spec(b4_p.shape),
        ],
        out_specs=pl.BlockSpec((bb, n_out_p), lambda i: (i, 0)),
        compiler_params=pltpu.CompilerParams(
            dimension_semantics=("parallel",)),
    )(x_p, w1_p, b1_p, w2_p, b2_p, w3_p, b3_p, w4_p, b4_p)

    # Strip batch / action padding, return in the input dtype.
    return out_p[:B, :n_actions].astype(x.dtype)


def init_linear(key, fan_in, fan_out, dtype=jnp.float32):
    """Deterministic init mimicking PyTorch Linear default (uniform +-1/sqrt(fan_in))."""
    kw, kb = jax.random.split(key)
    bound = 1.0 / jnp.sqrt(fan_in)
    w = jax.random.uniform(kw, (fan_in, fan_out), dtype, -bound, bound)
    b = jax.random.uniform(kb, (1, fan_out), dtype, -bound, bound)
    return w, b


def reference_forward_f32(x, params):
    h = x
    for i, (w, b) in enumerate(params):
        h = h @ w + b
        if i < len(params) - 1:
            h = jnp.maximum(h, 0.0)
    return h


def reference_forward_bf16(x, params):
    """Mirrors the kernel's bf16-matmul / f32-accumulate arithmetic exactly."""
    h = x.astype(jnp.bfloat16)
    for i, (w, b) in enumerate(params):
        h = jnp.dot(h, w.astype(jnp.bfloat16),
                    preferred_element_type=jnp.float32) + b.astype(jnp.float32)
        if i < len(params) - 1:
            h = jnp.maximum(h, 0.0).astype(jnp.bfloat16)
    return h


if __name__ == "__main__":
    key = jax.random.PRNGKey(0)
    B = 16           # small demo batch
    input_dims = 32
    n_actions = 4

    k_x, k1, k2, k3, k4 = jax.random.split(key, 5)
    state = jax.random.normal(k_x, (B, input_dims), jnp.float32)

    params = (
        init_linear(k1, input_dims, 128),
        init_linear(k2, 128, 256),
        init_linear(k3, 256, 256),
        init_linear(k4, 256, n_actions),
    )

    out = dqn_forward(state, params)
    out = jax.block_until_ready(out)
    assert out.shape == (B, n_actions)

    # Exact-arithmetic reference (bf16 matmuls, f32 accumulation) — tight check.
    ref_q = reference_forward_bf16(state, params)
    assert jnp.allclose(out, ref_q, atol=1e-2, rtol=1e-2), "mismatch vs bf16 reference"

    # Full-f32 module reference — loose check that bf16 is a faithful approximation.
    ref_f32 = reference_forward_f32(state, params)
    max_err = float(jnp.max(jnp.abs(out - ref_f32)))
    assert max_err < 5e-2, f"too far from f32 reference (max abs err {max_err})"

    print("KERNEL_OK")
</pallas_src>

<mosaic_0001>
module attributes {stable_mosaic.version = 11 : i64} {
  func.func @dqn_kernel(%arg0: i32, %arg1: memref<16x128xbf16, #tpu.memory_space<vmem>>, %arg2: memref<128x128xbf16, #tpu.memory_space<vmem>>, %arg3: memref<1x128xf32, #tpu.memory_space<vmem>>, %arg4: memref<128x256xbf16, #tpu.memory_space<vmem>>, %arg5: memref<1x256xf32, #tpu.memory_space<vmem>>, %arg6: memref<256x256xbf16, #tpu.memory_space<vmem>>, %arg7: memref<1x256xf32, #tpu.memory_space<vmem>>, %arg8: memref<256x128xbf16, #tpu.memory_space<vmem>>, %arg9: memref<1x128xf32, #tpu.memory_space<vmem>>, %arg10: memref<16x128xf32, #tpu.memory_space<vmem>>) attributes {dimension_semantics = [#tpu.dimension_semantics<parallel>], iteration_bounds = array<i64: 1>, scalar_prefetch = 0 : i64, scratch_operands = 0 : i64, tpu.core_type = #tpu.core_type<tc>, window_params = [{transform_indices = @transform_0, window_bounds = array<i64: 16, 128>}, {pipeline_mode = #tpu.pipeline_mode<synchronous>, transform_indices = @transform_1, window_bounds = array<i64: 128, 128>}, {pipeline_mode = #tpu.pipeline_mode<synchronous>, transform_indices = @transform_2, window_bounds = array<i64: 1, 128>}, {pipeline_mode = #tpu.pipeline_mode<synchronous>, transform_indices = @transform_3, window_bounds = array<i64: 128, 256>}, {pipeline_mode = #tpu.pipeline_mode<synchronous>, transform_indices = @transform_4, window_bounds = array<i64: 1, 256>}, {pipeline_mode = #tpu.pipeline_mode<synchronous>, transform_indices = @transform_5, window_bounds = array<i64: 256, 256>}, {pipeline_mode = #tpu.pipeline_mode<synchronous>, transform_indices = @transform_6, window_bounds = array<i64: 1, 256>}, {pipeline_mode = #tpu.pipeline_mode<synchronous>, transform_indices = @transform_7, window_bounds = array<i64: 256, 128>}, {pipeline_mode = #tpu.pipeline_mode<synchronous>, transform_indices = @transform_8, window_bounds = array<i64: 1, 128>}, {transform_indices = @transform_9, window_bounds = array<i64: 16, 128>}]} {
    %c0 = arith.constant 0 : index
    %c0_0 = arith.constant 0 : index
    %0 = vector.load %arg1[%c0, %c0_0] : memref<16x128xbf16, #tpu.memory_space<vmem>>, vector<16x128xbf16>
    %c0_1 = arith.constant 0 : index
    %c0_2 = arith.constant 0 : index
    %1 = vector.load %arg2[%c0_1, %c0_2] : memref<128x128xbf16, #tpu.memory_space<vmem>>, vector<128x128xbf16>
    %cst = arith.constant dense<0.000000e+00> : vector<16x128xf32>
    %2 = tpu.matmul %0, %1, %cst {dimension_numbers = #tpu.dot_dimension_numbers<[1], [0], [0], [1], [0, 0, 1, 1], [], []>} : vector<16x128xbf16>, vector<128x128xbf16>, vector<16x128xf32> -> vector<16x128xf32>
    %c0_3 = arith.constant 0 : index
    %c0_4 = arith.constant 0 : index
    %3 = vector.load %arg3[%c0_3, %c0_4] : memref<1x128xf32, #tpu.memory_space<vmem>>, vector<1x128xf32>
    %4 = vector.broadcast %3 : vector<1x128xf32> to vector<16x128xf32>
    %5 = arith.addf %2, %4 : vector<16x128xf32>
    %cst_5 = arith.constant 0.000000e+00 : f32
    %6 = vector.broadcast %cst_5 : f32 to vector<16x128xf32>
    %7 = arith.maximumf %5, %6 : vector<16x128xf32>
    %8 = arith.truncf %7 : vector<16x128xf32> to vector<16x128xbf16>
    %c0_6 = arith.constant 0 : index
    %c0_7 = arith.constant 0 : index
    %9 = vector.load %arg4[%c0_6, %c0_7] : memref<128x256xbf16, #tpu.memory_space<vmem>>, vector<128x256xbf16>
    %cst_8 = arith.constant dense<0.000000e+00> : vector<16x256xf32>
    %10 = tpu.matmul %8, %9, %cst_8 {dimension_numbers = #tpu.dot_dimension_numbers<[1], [0], [0], [1], [0, 0, 1, 1], [], []>} : vector<16x128xbf16>, vector<128x256xbf16>, vector<16x256xf32> -> vector<16x256xf32>
    %c0_9 = arith.constant 0 : index
    %c0_10 = arith.constant 0 : index
    %11 = vector.load %arg5[%c0_9, %c0_10] : memref<1x256xf32, #tpu.memory_space<vmem>>, vector<1x256xf32>
    %12 = vector.broadcast %11 : vector<1x256xf32> to vector<16x256xf32>
    %13 = arith.addf %10, %12 : vector<16x256xf32>
    %cst_11 = arith.constant 0.000000e+00 : f32
    %14 = vector.broadcast %cst_11 : f32 to vector<16x256xf32>
    %15 = arith.maximumf %13, %14 : vector<16x256xf32>
    %16 = arith.truncf %15 : vector<16x256xf32> to vector<16x256xbf16>
    %c0_12 = arith.constant 0 : index
    %c0_13 = arith.constant 0 : index
    %17 = vector.load %arg6[%c0_12, %c0_13] : memref<256x256xbf16, #tpu.memory_space<vmem>>, vector<256x256xbf16>
    %cst_14 = arith.constant dense<0.000000e+00> : vector<16x256xf32>
    %18 = tpu.matmul %16, %17, %cst_14 {dimension_numbers = #tpu.dot_dimension_numbers<[1], [0], [0], [1], [0, 0, 1, 1], [], []>} : vector<16x256xbf16>, vector<256x256xbf16>, vector<16x256xf32> -> vector<16x256xf32>
    %c0_15 = arith.constant 0 : index
    %c0_16 = arith.constant 0 : index
    %19 = vector.load %arg7[%c0_15, %c0_16] : memref<1x256xf32, #tpu.memory_space<vmem>>, vector<1x256xf32>
    %20 = vector.broadcast %19 : vector<1x256xf32> to vector<16x256xf32>
    %21 = arith.addf %18, %20 : vector<16x256xf32>
    %cst_17 = arith.constant 0.000000e+00 : f32
    %22 = vector.broadcast %cst_17 : f32 to vector<16x256xf32>
    %23 = arith.maximumf %21, %22 : vector<16x256xf32>
    %24 = arith.truncf %23 : vector<16x256xf32> to vector<16x256xbf16>
    %c0_18 = arith.constant 0 : index
    %c0_19 = arith.constant 0 : index
    %25 = vector.load %arg8[%c0_18, %c0_19] : memref<256x128xbf16, #tpu.memory_space<vmem>>, vector<256x128xbf16>
    %cst_20 = arith.constant dense<0.000000e+00> : vector<16x128xf32>
    %26 = tpu.matmul %24, %25, %cst_20 {dimension_numbers = #tpu.dot_dimension_numbers<[1], [0], [0], [1], [0, 0, 1, 1], [], []>} : vector<16x256xbf16>, vector<256x128xbf16>, vector<16x128xf32> -> vector<16x128xf32>
    %c0_21 = arith.constant 0 : index
    %c0_22 = arith.constant 0 : index
    %27 = vector.load %arg9[%c0_21, %c0_22] : memref<1x128xf32, #tpu.memory_space<vmem>>, vector<1x128xf32>
    %28 = vector.broadcast %27 : vector<1x128xf32> to vector<16x128xf32>
    %29 = arith.addf %26, %28 : vector<16x128xf32>
    %c0_23 = arith.constant 0 : index
    %c0_24 = arith.constant 0 : index
    %30 = vector.load %arg10[%c0_23, %c0_24] : memref<16x128xf32, #tpu.memory_space<vmem>>, vector<16x128xf32>
    tpu.vector_store %arg10[%c0_23, %c0_24], %29 {strides = array<i32>} : memref<16x128xf32, #tpu.memory_space<vmem>>, vector<16x128xf32>,
    return
  }
  func.func @transform_0(%arg0: i32) -> (i32, i32) {
    %c0_i32 = arith.constant 0 : i32
    %c0_i32_0 = arith.constant 0 : i32
    return %arg0, %c0_i32 : i32, i32
  }
  func.func @transform_1(%arg0: i32) -> (i32, i32) {
    %c0_i32 = arith.constant 0 : i32
    %c0_i32_0 = arith.constant 0 : i32
    %c0_i32_1 = arith.constant 0 : i32
    return %c0_i32, %c0_i32_0 : i32, i32
  }
  func.func @transform_2(%arg0: i32) -> (i32, i32) {
    %c0_i32 = arith.constant 0 : i32
    %c0_i32_0 = arith.constant 0 : i32
    %c0_i32_1 = arith.constant 0 : i32
    return %c0_i32, %c0_i32_0 : i32, i32
  }
  func.func @transform_3(%arg0: i32) -> (i32, i32) {
    %c0_i32 = arith.constant 0 : i32
    %c0_i32_0 = arith.constant 0 : i32
    %c0_i32_1 = arith.constant 0 : i32
    return %c0_i32, %c0_i32_0 : i32, i32
  }
  func.func @transform_4(%arg0: i32) -> (i32, i32) {
    %c0_i32 = arith.constant 0 : i32
    %c0_i32_0 = arith.constant 0 : i32
    %c0_i32_1 = arith.constant 0 : i32
    return %c0_i32, %c0_i32_0 : i32, i32
  }
  func.func @transform_5(%arg0: i32) -> (i32, i32) {
    %c0_i32 = arith.constant 0 : i32
    %c0_i32_0 = arith.constant 0 : i32
    %c0_i32_1 = arith.constant 0 : i32
    return %c0_i32, %c0_i32_0 : i32, i32
  }
  func.func @transform_6(%arg0: i32) -> (i32, i32) {
    %c0_i32 = arith.constant 0 : i32
    %c0_i32_0 = arith.constant 0 : i32
    %c0_i32_1 = arith.constant 0 : i32
    return %c0_i32, %c0_i32_0 : i32, i32
  }
  func.func @transform_7(%arg0: i32) -> (i32, i32) {
    %c0_i32 = arith.constant 0 : i32
    %c0_i32_0 = arith.constant 0 : i32
    %c0_i32_1 = arith.constant 0 : i32
    return %c0_i32, %c0_i32_0 : i32, i32
  }
  func.func @transform_8(%arg0: i32) -> (i32, i32) {
    %c0_i32 = arith.constant 0 : i32
    %c0_i32_0 = arith.constant 0 : i32
    %c0_i32_1 = arith.constant 0 : i32
    return %c0_i32, %c0_i32_0 : i32, i32
  }
  func.func @transform_9(%arg0: i32) -> (i32, i32) {
    %c0_i32 = arith.constant 0 : i32
    %c0_i32_0 = arith.constant 0 : i32
    return %arg0, %c0_i32 : i32, i32
  }
}

</mosaic_0001>

<bundles_post_ra>
// kernel: dqn_forward.1
= control target key start
LH: loop header
LB: loop body
LE: loop exit
PB: predicated region body
PF: predicated region fallthrough
CT: control target
= control target key end

     0   :  { %v974_v0 = vmov 0.0   ;;  %vm975_vm0 = vmmov 0   ;;  %v976_v26 = vmov 0   ;;  %s1264_s1 = inlined_call_operand.vmem [shape: bf16[128,128], index: 1, kind: input, shape index: {}]   ;;  %s1265_s3 = inlined_call_operand.vmem [shape: bf16[128,256], index: 3, kind: input, shape index: {}]   ;;  %s1266_s0 = inlined_call_operand.vmem [shape: bf16[16,128], index: 0, kind: input, shape index: {}]   ;;  %s1267_s5 = inlined_call_operand.vmem [shape: bf16[256,256], index: 5, kind: input, shape index: {}]   ;;  %s1268_s2 = inlined_call_operand.vmem [shape: f32[1,128], index: 2, kind: input, shape index: {}]   ;;  %s1269_s7 = inlined_call_operand.vmem [shape: bf16[256,128], index: 7, kind: input, shape index: {}]   ;;  %s1270_s4 = inlined_call_operand.vmem [shape: f32[1,256], index: 4, kind: input, shape index: {}]   ;;  %s1271_s6 = inlined_call_operand.vmem [shape: f32[1,256], index: 6, kind: input, shape index: {}]   ;;  %s1272_s8 = inlined_call_operand.vmem [shape: f32[1,128], index: 8, kind: input, shape index: {}]   ;;  %s1273_s9 = inlined_call_operand.vmem [shape: f32[16,128], index: 9, kind: output, shape index: {}]  }
   0x1   :  { %854 = vmatprep.subr.bf16.mxu0 %v974_v0  ;;  %v877_v1 = vld [vmem:[%s1264_s1] sm:$0xff]   ;;  %870 = vmatprep.mubr.msk.bf16.mxu0 %vm975_vm0, %v974_v0  ;;  %v878_v2 = vld [vmem:[%s1264_s1 + $0x8] sm:$0xff]   ;;  %v879_v3 = vld [vmem:[%s1264_s1 + $0x10] sm:$0xff]  }
   0x2   :  { %855 = vmatpush3.bf16.msra.mxu0 %v877_v1  ;;  %v880_v4 = vld [vmem:[%s1264_s1 + $0x18] sm:$0xff]   ;;  %v886_v5 = vld [vmem:[%s1265_s3 + $0x4] ss:$8 sps:$4 sm:$0xff]   ;;  %v888_v6 = vld [vmem:[%s1265_s3] ss:$8 sps:$4 sm:$0xff]   ;;  %296 = vmatprep.mubr.bf16.mxu1 %v976_v26 }
   0x3   :  { %856 = vmatprep.subr.bf16.mxu0 %v974_v0  ;;  %264 = vmatprep.subr.bf16.mxu1 %v886_v5  ;;  %v889_v7 = vld [vmem:[%s1265_s3 + $0x14] ss:$8 sps:$4 sm:$0xff]   ;;  %v891_v8 = vld [vmem:[%s1265_s3 + $0x10] ss:$8 sps:$4 sm:$0xff]   ;;  %v892_v9 = vld [vmem:[%s1265_s3 + $0x24] ss:$8 sps:$4 sm:$0xff]  }
   0x4   :  { %265 = vmatpush1.bf16.msra.mxu1 %v888_v6  ;;  %v881_v10 = vld [vmem:[%s1264_s1 + $0x20] sm:$0xff]   ;;  %v895_v12 = vld [vmem:[%s1265_s3 + $0x34] ss:$8 sps:$4 sm:$0xff]   ;;  %v882_v13 = vld [vmem:[%s1264_s1 + $0x28] sm:$0xff]  }
   0x5   :  { %266 = vmatprep.subr.bf16.mxu1 %v889_v7  ;;  %v894_v11 = vld [vmem:[%s1265_s3 + $0x20] ss:$8 sps:$4 sm:$0xff]   ;;  %v897_v14 = vld [vmem:[%s1265_s3 + $0x30] ss:$8 sps:$4 sm:$0xff]   ;;  %v898_v15 = vld [vmem:[%s1265_s3 + $0x44] ss:$8 sps:$4 sm:$0xff]  }
   0x6   :  { %857 = vmatpush3.bf16.msra.mxu0 %v878_v2  ;;  %v883_v16 = vld [vmem:[%s1264_s1 + $0x30] sm:$0xff]   ;;  %v900_v17 = vld [vmem:[%s1265_s3 + $0x40] ss:$8 sps:$4 sm:$0xff]   ;;  %v884_v19 = vld [vmem:[%s1264_s1 + $0x38] sm:$0xff]  }
   0x7   :  { %858 = vmatprep.subr.bf16.mxu0 %v974_v0  ;;  %v901_v18 = vld [vmem:[%s1265_s3 + $0x54] ss:$8 sps:$4 sm:$0xff]   ;;  %v903_v20 = vld [vmem:[%s1265_s3 + $0x50] ss:$8 sps:$4 sm:$0xff]   ;;  %v885_v21 = vld [vmem:[%s1266_s0] sm:$0xff]  }
   0x8   :  { %267 = vmatpush1.bf16.msra.mxu1 %v891_v8  ;;  %v904_v22 = vld [vmem:[%s1265_s3 + $0x64] ss:$8 sps:$4 sm:$0xff]   ;;  %v906_v23 = vld [vmem:[%s1265_s3 + $0x60] ss:$8 sps:$4 sm:$0xff]   ;;  %v907_v24 = vld [vmem:[%s1265_s3 + $0x74] ss:$8 sps:$4 sm:$0xff]  }
   0x9   :  { %268 = vmatprep.subr.bf16.mxu1 %v892_v9  ;;  %v909_v25 = vld [vmem:[%s1265_s3 + $0x70] ss:$8 sps:$4 sm:$0xff]   ;;  %v910_v27 = vld [vmem:[%s1267_s5] ss:$8 sps:$4 sm:$0xff]   ;;  %v912_v28 = vld [vmem:[%s1267_s5 + $0x4] ss:$8 sps:$4 sm:$0xff]  }
   0xa   :  { %859 = vmatpush3.bf16.msra.mxu0 %v879_v3  ;;  %v915_v29 = vld [vmem:[%s1267_s5 + $0x14] ss:$8 sps:$4 sm:$0xff]   ;;  %v913_v30 = vld [vmem:[%s1267_s5 + $0x10] ss:$8 sps:$4 sm:$0xff]   ;;  %v918_v31 = vld [vmem:[%s1267_s5 + $0x24] ss:$8 sps:$4 sm:$0xff]  }
   0xb   :  { %860 = vmatprep.subr.bf16.mxu0 %v974_v0  ;;  %v916_v32 = vld [vmem:[%s1267_s5 + $0x20] ss:$8 sps:$4 sm:$0xff]   ;;  %v921_v33 = vld [vmem:[%s1267_s5 + $0x34] ss:$8 sps:$4 sm:$0xff]   ;;  %v919_v34 = vld [vmem:[%s1267_s5 + $0x30] ss:$8 sps:$4 sm:$0xff]  }
   0xc   :  { %269 = vmatpush1.bf16.msra.mxu1 %v894_v11  ;;  %v924_v35 = vld [vmem:[%s1267_s5 + $0x44] ss:$8 sps:$4 sm:$0xff]   ;;  %v922_v36 = vld [vmem:[%s1267_s5 + $0x40] ss:$8 sps:$4 sm:$0xff]   ;;  %v927_v37 = vld [vmem:[%s1267_s5 + $0x54] ss:$8 sps:$4 sm:$0xff]  }
   0xd   :  { %270 = vmatprep.subr.bf16.mxu1 %v895_v12  ;;  %v925_v38 = vld [vmem:[%s1267_s5 + $0x50] ss:$8 sps:$4 sm:$0xff]   ;;  %v930_v39 = vld [vmem:[%s1267_s5 + $0x64] ss:$8 sps:$4 sm:$0xff]   ;;  %v928_v40 = vld [vmem:[%s1267_s5 + $0x60] ss:$8 sps:$4 sm:$0xff]  }
   0xe   :  { %861 = vmatpush3.bf16.msra.mxu0 %v880_v4  ;;  %v933_v41 = vld [vmem:[%s1267_s5 + $0x74] ss:$8 sps:$4 sm:$0xff]   ;;  %v931_v42 = vld [vmem:[%s1267_s5 + $0x70] ss:$8 sps:$4 sm:$0xff]   ;;  %v936_v43 = vld [vmem:[%s1267_s5 + $0x84] ss:$8 sps:$4 sm:$0xff]  }
   0xf   :  { %862 = vmatprep.subr.bf16.mxu0 %v974_v0  ;;  %v934_v44 = vld [vmem:[%s1267_s5 + $0x80] ss:$8 sps:$4 sm:$0xff]   ;;  %v939_v45 = vld [vmem:[%s1267_s5 + $0x94] ss:$8 sps:$4 sm:$0xff]   ;;  %v937_v46 = vld [vmem:[%s1267_s5 + $0x90] ss:$8 sps:$4 sm:$0xff]  }
  0x10   :  { %271 = vmatpush1.bf16.msra.mxu1 %v897_v14  ;;  %v942_v47 = vld [vmem:[%s1267_s5 + $0xa4] ss:$8 sps:$4 sm:$0xff]   ;;  %v940_v48 = vld [vmem:[%s1267_s5 + $0xa0] ss:$8 sps:$4 sm:$0xff]   ;;  %v945_v49 = vld [vmem:[%s1267_s5 + $0xb4] ss:$8 sps:$4 sm:$0xff]  }
  0x11   :  { %272 = vmatprep.subr.bf16.mxu1 %v898_v15  ;;  %v943_v50 = vld [vmem:[%s1267_s5 + $0xb0] ss:$8 sps:$4 sm:$0xff]   ;;  %v948_v51 = vld [vmem:[%s1267_s5 + $0xc4] ss:$8 sps:$4 sm:$0xff]   ;;  %v946_v52 = vld [vmem:[%s1267_s5 + $0xc0] ss:$8 sps:$4 sm:$0xff]  }
  0x12   :  { %863 = vmatpush3.bf16.msra.mxu0 %v881_v10  ;;  %v951_v53 = vld [vmem:[%s1267_s5 + $0xd4] ss:$8 sps:$4 sm:$0xff]   ;;  %v949_v54 = vld [vmem:[%s1267_s5 + $0xd0] ss:$8 sps:$4 sm:$0xff]   ;;  %v748_v55 = vld [vmem:[%s1268_s2] ss:$0 sm:$0xff] }
  0x13   :  { %864 = vmatprep.subr.bf16.mxu0 %v974_v0  ;;  %v954_v1 = vld [vmem:[%s1267_s5 + $0xe4] ss:$8 sps:$4 sm:$0xff]   ;;  %v952_v2 = vld [vmem:[%s1267_s5 + $0xe0] ss:$8 sps:$4 sm:$0xff]   ;;  %v957_v3 = vld [vmem:[%s1267_s5 + $0xf4] ss:$8 sps:$4 sm:$0xff]  }
  0x14   :  { %273 = vmatpush1.bf16.msra.mxu1 %v900_v17  ;;  %v955_v4 = vld [vmem:[%s1267_s5 + $0xf0] ss:$8 sps:$4 sm:$0xff]   ;;  %v958_v5 = vld [vmem:[%s1269_s7 + $0x40] sm:$0xff]   ;;  %v960_v7 = vld [vmem:[%s1269_s7 + $0x48] sm:$0xff]  }
  0x15   :  { %274 = vmatprep.subr.bf16.mxu1 %v901_v18  ;;  %v959_v6 = vld [vmem:[%s1269_s7] sm:$0xff]   ;;  %v961_v8 = vld [vmem:[%s1269_s7 + $0x8] sm:$0xff]   ;;  %v962_v9 = vld [vmem:[%s1269_s7 + $0x50] sm:$0xff]  }
  0x16   :  { %865 = vmatpush3.bf16.msra.mxu0 %v882_v13  ;;  %v963_v10 = vld [vmem:[%s1269_s7 + $0x10] sm:$0xff]   ;;  %v964_v11 = vld [vmem:[%s1269_s7 + $0x58] sm:$0xff]   ;;  %v966_v13 = vld [vmem:[%s1269_s7 + $0x60] sm:$0xff]  }
  0x17   :  { %866 = vmatprep.subr.bf16.mxu0 %v974_v0  ;;  %v965_v12 = vld [vmem:[%s1269_s7 + $0x18] sm:$0xff]   ;;  %v967_v14 = vld [vmem:[%s1269_s7 + $0x20] sm:$0xff]   ;;  %v968_v15 = vld [vmem:[%s1269_s7 + $0x68] sm:$0xff]  }
  0x18   :  { %275 = vmatpush1.bf16.msra.mxu1 %v903_v20 }
  0x19   :  { %276 = vmatprep.subr.bf16.mxu1 %v904_v22 }
  0x1a   :  { %867 = vmatpush3.bf16.msra.mxu0 %v883_v16  ;;  %v174_v16 = vlaneseq }
  0x1b   :  { %868 = vmatprep.subr.bf16.mxu0 %v974_v0 }
  0x1c   :  { %277 = vmatpush1.bf16.msra.mxu1 %v906_v23  ;;  %v175_v17 = vshrl.u32 %v174_v16, 7 }
  0x1d   :  { %278 = vmatprep.subr.bf16.mxu1 %v907_v24 }
  0x1e   :  { %869 = vmatpush3.bf16.msra.mxu0 %v884_v19  ;;  %v176_v18 = vsub.s32 0, %v175_v17  ;;  %v172_v19 = vld [vmem:[%s1270_s4] sm:$0x3]  ;;  %v180_v20 = vsub.s32 1, %v175_v17 }
  0x1f   :  { %517 = vmatprep.subr.bf16.mxu0 %v912_v28 }
  0x20   :  { %279 = vmatpush1.bf16.msra.mxu1 %v909_v25  ;;  %v181_v22 = vrot.slane %v172_v19, %v180_v20 }
  0x21   :  { %871 = vmatmul.mubr.bf16.vlgmr.msra.gmra.mrb[0].mxu0 %v885_v21  ;;  %832 = vmatprep.subr.bf16.mxu1 %v958_v5  ;;  %v177_v21 = vrot.slane %v172_v19, %v176_v18 }
  0x22   :  { %518 = vmatpush1.bf16.msra.mxu0 %v910_v27 }
  0x23   :  { %519 = vmatprep.subr.bf16.mxu0 %v915_v29 }
  0x26   :  { %520 = vmatpush1.bf16.msra.mxu0 %v913_v30 }
  0x27   :  { %521 = vmatprep.subr.bf16.mxu0 %v918_v31 }
  0x2a   :  { %522 = vmatpush1.bf16.msra.mxu0 %v916_v32 }
  0x2b   :  { %523 = vmatprep.subr.bf16.mxu0 %v921_v33 }
  0x2e   :  { %524 = vmatpush1.bf16.msra.mxu0 %v919_v34 }
  0x2f   :  { %525 = vmatprep.subr.bf16.mxu0 %v924_v35 }
  0x32   :  { %526 = vmatpush1.bf16.msra.mxu0 %v922_v36 }
  0x33   :  { %527 = vmatprep.subr.bf16.mxu0 %v927_v37  ;;  %v969_v37 = vld [vmem:[%s1269_s7 + $0x28] sm:$0xff]  }
  0x36   :  { %528 = vmatpush1.bf16.msra.mxu0 %v925_v38  ;;  %v970_v38 = vld [vmem:[%s1269_s7 + $0x70] sm:$0xff]  }
  0x37   :  { %529 = vmatprep.subr.bf16.mxu0 %v930_v39  ;;  %v971_v39 = vld [vmem:[%s1269_s7 + $0x30] sm:$0xff]  }
  0x3a   :  { %530 = vmatpush1.bf16.msra.mxu0 %v928_v40  ;;  %v972_v40 = vld [vmem:[%s1269_s7 + $0x78] sm:$0xff]  }
  0x3b   :  { %531 = vmatprep.subr.bf16.mxu0 %v933_v41  ;;  %v973_v41 = vld [vmem:[%s1269_s7 + $0x38] sm:$0xff]  }
  0x3e   :  { %532 = vmatpush1.bf16.msra.mxu0 %v931_v42  ;;  %v345_v42 = vld [vmem:[%s1271_s6] sm:$0x3] }
  0x3f   :  { %533 = vmatprep.subr.bf16.mxu0 %v936_v43  ;;  %v350_v43 = vrot.slane %v345_v42, %v176_v18 }
  0x42   :  { %534 = vmatpush1.bf16.msra.mxu0 %v934_v44  ;;  %v354_v44 = vrot.slane %v345_v42, %v180_v20 }
  0x43   :  { %535 = vmatprep.subr.bf16.mxu0 %v939_v45 }
  0x46   :  { %536 = vmatpush1.bf16.msra.mxu0 %v937_v46 }
  0x47   :  { %537 = vmatprep.subr.bf16.mxu0 %v942_v47 }
  0x4a   :  { %538 = vmatpush1.bf16.msra.mxu0 %v940_v48 }
  0x4b   :  { %539 = vmatprep.subr.bf16.mxu0 %v945_v49 }
  0x4e   :  { %540 = vmatpush1.bf16.msra.mxu0 %v943_v50 }
  0x4f   :  { %541 = vmatprep.subr.bf16.mxu0 %v948_v51 }
  0x52   :  { %542 = vmatpush1.bf16.msra.mxu0 %v946_v52 }
  0x53   :  { %543 = vmatprep.subr.bf16.mxu0 %v951_v53 }
  0x56   :  { %544 = vmatpush1.bf16.msra.mxu0 %v949_v54 }
  0x57   :  { %545 = vmatprep.subr.bf16.mxu0 %v954_v1 }
  0x5a   :  { %546 = vmatpush1.bf16.msra.mxu0 %v952_v2 }
  0x5b   :  { %547 = vmatprep.subr.bf16.mxu0 %v957_v3 }
  0x5e   :  { %548 = vmatpush1.bf16.msra.mxu0 %v955_v4 }
  0xf4   :  { %v146_v56 = vpop.f32.mrb[0].mxu0 }
  0xf5   :  { %v147_v57 = vadd.f32 %v748_v55, %v146_v56  ;;  %v872_v58 = vpop.f32.mrb[1].mxu0 }
  0xf6   :  { %v149_v59 = vpop.f32.mrb[2].mxu0 }
  0xf7   :  { %v150_v60 = vadd.f32 %v748_v55, %v149_v59  ;;  %v873_v61 = vpop.f32.mrb[3].mxu0  ;;  %v153_v62 = vmax.f32 %v147_v57, 0.0 }
  0xf9   :  { %v154_v63 = vmax.f32 %v150_v60, 0.0  ;;  %v806_v60 = vld [vmem:[%s1272_s8] ss:$0 sm:$0xff] }
  0xfb   :  { %v155_v0 = vpack.c.bf16 %v154_v63, %v153_v62 }
  0xfd   :  { %297 = vmatmul.mubr.bf16.vlgmr.msra.gmra.mrb[0].mxu1 %v155_v0 }
  0xfe   :  { %833 = vmatpush3.bf16.msra.mxu1 %v959_v6 }
  0xff   :  { %834 = vmatprep.subr.bf16.mxu1 %v960_v7 }
 0x102   :  { %835 = vmatpush3.bf16.msra.mxu1 %v961_v8 }
 0x103   :  { %836 = vmatprep.subr.bf16.mxu1 %v962_v9 }
 0x106   :  { %837 = vmatpush3.bf16.msra.mxu1 %v963_v10 }
 0x107   :  { %838 = vmatprep.subr.bf16.mxu1 %v964_v11 }
 0x10a   :  { %839 = vmatpush3.bf16.msra.mxu1 %v965_v12 }
 0x10b   :  { %840 = vmatprep.subr.bf16.mxu1 %v966_v13 }
 0x10e   :  { %841 = vmatpush3.bf16.msra.mxu1 %v967_v14 }
 0x10f   :  { %842 = vmatprep.subr.bf16.mxu1 %v968_v15 }
 0x112   :  { %843 = vmatpush3.bf16.msra.mxu1 %v969_v37 }
 0x113   :  { %844 = vmatprep.subr.bf16.mxu1 %v970_v38 }
 0x116   :  { %845 = vmatpush3.bf16.msra.mxu1 %v971_v39 }
 0x117   :  { %846 = vmatprep.subr.bf16.mxu1 %v972_v40 }
 0x11a   :  { %847 = vmatpush3.bf16.msra.mxu1 %v973_v41 }
 0x1d0   :  { %v298_v23 = vpop.f32.mrb[0].mxu1 }
 0x1d1   :  { %v299_v24 = vadd.f32 %v298_v23, %v177_v21  ;;  %v300_v25 = vpop.f32.mrb[1].mxu1 }
 0x1d2   :  { %v301_v26 = vadd.f32 %v300_v25, %v181_v22  ;;  %v302_v27 = vpop.f32.mrb[2].mxu1 }
 0x1d3   :  { %v303_v28 = vadd.f32 %v302_v27, %v177_v21  ;;  %v304_v29 = vpop.f32.mrb[3].mxu1  ;;  %v307_v31 = vmax.f32 %v299_v24, 0.0 }
 0x1d4   :  { %v305_v30 = vadd.f32 %v304_v29, %v181_v22  ;;  %v308_v33 = vmax.f32 %v301_v26, 0.0 }
 0x1d5   :  { %v309_v32 = vmax.f32 %v303_v28, 0.0 }
 0x1d6   :  { %v310_v34 = vmax.f32 %v305_v30, 0.0 }
 0x1d7   :  { %v311_v35 = vpack.c.bf16 %v309_v32, %v307_v31 }
 0x1d8   :  { %v312_v36 = vpack.c.bf16 %v310_v34, %v308_v33 }
 0x1da   :  { %549 = vmatprep.mubr.bf16.mxu0 %v312_v36 }
 0x1db   :  { %550 = vmatmul.mubr.bf16.vlgmr.msra.gmra.mrb[4].mxu0 %v311_v35 }
 0x2ae   :  { %v551_v45 = vpop.f32.mrb[4].mxu0 }
 0x2af   :  { %v552_v46 = vadd.f32 %v551_v45, %v350_v43  ;;  %v553_v47 = vpop.f32.mrb[5].mxu0 }
 0x2b0   :  { %v554_v48 = vadd.f32 %v553_v47, %v354_v44  ;;  %v555_v49 = vpop.f32.mrb[6].mxu0 }
 0x2b1   :  { %v556_v50 = vadd.f32 %v555_v49, %v350_v43  ;;  %v557_v51 = vpop.f32.mrb[7].mxu0  ;;  %v560_v53 = vmax.f32 %v552_v46, 0.0 }
 0x2b2   :  { %v558_v52 = vadd.f32 %v557_v51, %v354_v44  ;;  %v561_v55 = vmax.f32 %v554_v48, 0.0 }
 0x2b3   :  { %v562_v54 = vmax.f32 %v556_v50, 0.0 }
 0x2b4   :  { %v563_v56 = vmax.f32 %v558_v52, 0.0 }
 0x2b5   :  { %v564_v57 = vpack.c.bf16 %v562_v54, %v560_v53 }
 0x2b6   :  { %v565_v58 = vpack.c.bf16 %v563_v56, %v561_v55 }
 0x2b8   :  { %733 = vmatprep.mubr.bf16.mxu1 %v565_v58 }
 0x2b9   :  { %734 = vmatmul.mubr.bf16.vlgmr.msra.gmra.mrb[4].mxu1 %v564_v57 }
 0x38c   :  { %v848_v59 = vpop.f32.mrb[4].mxu1 }
 0x38d   :  { %v849_v61 = vpop.f32.mrb[5].mxu1 }
 0x38e   :  { %v850_v62 = vadd.f32 %v849_v61, %v848_v59  ;;  %v851_v63 = vpop.f32.mrb[6].mxu1 }
 0x38f   :  { %v852_v0 = vpop.f32.mrb[7].mxu1 }
 0x390   :  { %v736_v1 = vadd.f32 %v850_v62, %v806_v60  ;;  %v853_v2 = vadd.f32 %v852_v0, %v851_v63 }
 0x392   :  { %742 = vst [vmem:[%s1273_s9] sm:$0xff] %v736_v1  ;;  %v739_v3 = vadd.f32 %v853_v2, %v806_v60 }
 0x394   :  { %743 = vst [vmem:[%s1273_s9 + $0x8] sm:$0xff] %v739_v3 }

</bundles_post_ra>
